<compile_context>
chip_gen: v6e
topology: v6e:2x2x1
jax: 0.10.0
libtpu: 0.0.40
codegen_flags: <defaults>
</compile_context>

<pallas_src>
import functools

import jax
import jax.numpy as jnp
from jax import lax
from jax.experimental import pallas as pl
from jax.experimental.pallas import tpu as pltpu


def _masked_softmax(score, lens):
    """score: (tb, 1, L) f32, lens: (tb, 1, 1) i32 -> (tb, 1, L) f32."""
    t_idx = lax.broadcasted_iota(jnp.int32, score.shape, 2)
    score = jnp.where(t_idx < lens, score, jnp.float32(-jnp.inf))
    m = jnp.max(score, axis=-1, keepdims=True)
    e = jnp.exp(score - m)
    denom = jnp.sum(e, axis=-1, keepdims=True)
    return e * pl.reciprocal(denom, approx=False)


def _attn_kernel_single(hid_ref, enc_ref, lens_ref, out_ref):
    # hid_ref : (tb, 1, H)   f32
    # enc_ref : (tb, L, H)   f32
    # lens_ref: (tb, 1, 1)   i32
    # out_ref : (tb, 1, L)   f32
    # Batched MXU matmul with a single query row per batch element (q @ k^T).
    score = jnp.einsum("bvh,blh->bvl", hid_ref[...], enc_ref[...],
                       preferred_element_type=jnp.float32)       # (tb, 1, L)
    out_ref[...] = _masked_softmax(score, lens_ref[...])


def _attn_kernel_hchunk(hid_ref, enc_ref, lens_ref, out_ref, score_ref,
                        *, h_total, h_chunk, mask_tail):
    # Reduction over H chunks (grid axis 1, "arbitrary"); partial scores
    # accumulate in VMEM scratch, softmax finalizes on the last chunk.
    k = pl.program_id(1)
    hid = hid_ref[...]            # (tb, 1, th)
    enc = enc_ref[...]            # (tb, L, th)
    if mask_tail:
        # Last H chunk overhangs the array: zero BOTH operands there so
        # out-of-bounds garbage (possibly inf/NaN) never reaches the MXU.
        h_idx = h_chunk * k + lax.broadcasted_iota(jnp.int32, hid.shape, 2)
        valid_h = h_idx < h_total                       # (tb, 1, th)
        hid = jnp.where(valid_h, hid, jnp.float32(0.0))
        enc = jnp.where(valid_h, enc, jnp.float32(0.0))  # bcast over L
    partial = jnp.einsum("bvh,blh->bvl", hid, enc,
                         preferred_element_type=jnp.float32)     # (tb, 1, L)

    @pl.when(k == 0)
    def _():
        score_ref[...] = jnp.zeros_like(score_ref)

    score_ref[...] += partial

    @pl.when(k == pl.num_programs(1) - 1)
    def _():
        out_ref[...] = _masked_softmax(score_ref[...], lens_ref[...])


def _device_kind():
    try:
        return jax.devices()[0].device_kind.lower()
    except Exception:
        return ""


def attention_1(hidden, encoder_outputs, lens=None, *, block_bytes_target=None):
    """Pallas implementation of Attention_1.forward.

    hidden:           (B, H)    float32
    encoder_outputs:  (B, L, H) float32
    lens:             (B,) int  or None
    returns:          (B, 1, L) float32
    """
    B, L, H = encoder_outputs.shape
    assert hidden.shape == (B, H)

    enc = encoder_outputs.astype(jnp.float32)
    hid3 = hidden.astype(jnp.float32).reshape(B, 1, H)     # free layout plumbing
    if lens is None:
        lens_i = jnp.full((B,), L, dtype=jnp.int32)
    else:
        lens_i = jnp.minimum(lens.astype(jnp.int32), L)
    lens3 = lens_i.reshape(B, 1, 1)

    kind = _device_kind()
    is_v7 = "v7" in kind
    multi_tc = is_v7 or ("v4" in kind) or ("v5p" in kind)   # 2 TCs per chip

    if block_bytes_target is None:
        # ~8 MiB/buffer on 128-MiB-VMEM parts, ~5 MiB on v7x (64 MiB VMEM);
        # double-buffered footprint stays well inside the scoped VMEM budget.
        block_bytes_target = (5 << 20) if is_v7 else (8 << 20)
    limit_cap = (40 << 20) if is_v7 else (96 << 20)

    row_bytes = L * H * 4
    use_hchunk = (row_bytes > block_bytes_target) and (H > 128)

    if not use_hchunk:
        # Whole (L, H) row per batch element resident; single grid axis.
        # TODO(synk): extreme-L rows with H <= 128 would need an L-tiled
        # online-softmax variant; not implemented here.
        th = H
        tb = int(max(1, min(B, block_bytes_target // max(row_bytes, 1))))
        if multi_tc and B >= 2:
            tb = min(tb, -(-B // 2))        # grid >= 2 so both TCs get work
        nb = -(-B // tb)
        grid = (nb,)
        kernel = _attn_kernel_single
        in_specs = [
            pl.BlockSpec((tb, 1, H), lambda i: (i, 0, 0)),
            pl.BlockSpec((tb, L, H), lambda i: (i, 0, 0)),
            pl.BlockSpec((tb, 1, 1), lambda i: (i, 0, 0)),
        ]
        out_specs = pl.BlockSpec((tb, 1, L), lambda i: (i, 0, 0))
        scratch = []
        dims = ("parallel",)
    else:
        # H-chunked reduction keeps blocks in the DMA sweet spot when a full
        # (L, H) row would blow the VMEM budget (most important on v7x).
        th = ((block_bytes_target // (L * 4)) // 128) * 128
        th = max(128, min(th, (H // 128) * 128))
        tb = int(max(1, min(B, block_bytes_target // (L * th * 4))))
        if multi_tc and B >= 2:
            tb = min(tb, -(-B // 2))
        nb = -(-B // tb)
        nk = -(-H // th)
        grid = (nb, nk)
        kernel = functools.partial(_attn_kernel_hchunk, h_total=H, h_chunk=th,
                                   mask_tail=(H % th != 0))
        in_specs = [
            pl.BlockSpec((tb, 1, th), lambda i, k: (i, 0, k)),
            pl.BlockSpec((tb, L, th), lambda i, k: (i, 0, k)),
            pl.BlockSpec((tb, 1, 1), lambda i, k: (i, 0, 0)),
        ]
        out_specs = pl.BlockSpec((tb, 1, L), lambda i, k: (i, 0, 0))
        scratch = [pltpu.VMEM((tb, 1, L), jnp.float32)]
        dims = ("parallel", "arbitrary")

    # Explicit VMEM budget: double-buffered blocks + scratch + headroom.
    blk_bytes = (tb * th + tb * L * th + tb + tb * L) * 4
    scratch_bytes = tb * L * 4 if scratch else 0
    vmem_limit = int(min(max(2 * blk_bytes + scratch_bytes + (8 << 20),
                             16 << 20), limit_cap))

    cost = pl.CostEstimate(
        flops=int(2 * B * L * H + 6 * B * L),
        transcendentals=int(B * L),
        bytes_accessed=int(4 * (B * L * H + B * H + 2 * B * L) + 4 * B),
    )

    return pl.pallas_call(
        kernel,
        out_shape=jax.ShapeDtypeStruct((B, 1, L), jnp.float32),
        grid_spec=pltpu.PrefetchScalarGridSpec(
            num_scalar_prefetch=0,
            grid=grid,
            in_specs=in_specs,
            out_specs=out_specs,
            scratch_shapes=scratch,
        ),
        compiler_params=pltpu.CompilerParams(
            dimension_semantics=dims,
            vmem_limit_bytes=vmem_limit,
        ),
        cost_estimate=cost,
    )(hid3, enc, lens3)


def _reference(hidden, encoder_outputs, lens):
    # pure-JAX reference matching the PyTorch module semantics
    score = jnp.einsum("blh,bh->bl", encoder_outputs, hidden)
    L = encoder_outputs.shape[1]
    mask = jnp.arange(L)[None, :] < lens[:, None]
    score = jnp.where(mask, score, -jnp.inf)
    return jax.nn.softmax(score, axis=-1)[:, None, :]


if __name__ == "__main__":
    key = jax.random.PRNGKey(0)

    # --- main path: whole (L, H) row resident, single grid axis ------------
    B, L, H = 2, 8, 32
    k1, k2 = jax.random.split(key)
    hidden = jax.random.normal(k1, (B, H), dtype=jnp.float32)
    encoder_outputs = jax.random.normal(k2, (B, L, H), dtype=jnp.float32)
    lens = jnp.array([8, 5], dtype=jnp.int32)

    out = jax.block_until_ready(attention_1(hidden, encoder_outputs, lens))
    ref = _reference(hidden, encoder_outputs, lens)
    assert out.shape == (B, 1, L)
    assert jnp.allclose(out, ref, atol=1e-5, rtol=1e-5), "single-chunk mismatch"

    # --- fallback path: H-chunked reduction (forced via tiny block target) --
    B2, L2, H2 = 2, 64, 300
    k3, k4 = jax.random.split(k2)
    hidden2 = jax.random.normal(k3, (B2, H2), dtype=jnp.float32)
    enc2 = jax.random.normal(k4, (B2, L2, H2), dtype=jnp.float32)
    lens2 = jnp.array([64, 40], dtype=jnp.int32)

    out2 = jax.block_until_ready(
        attention_1(hidden2, enc2, lens2, block_bytes_target=48 * 1024))
    ref2 = _reference(hidden2, enc2, lens2)
    assert out2.shape == (B2, 1, L2)
    assert jnp.allclose(out2, ref2, atol=1e-4, rtol=1e-4), "h-chunk mismatch"

    print("KERNEL_OK")
</pallas_src>

<mosaic_0001>
module attributes {stable_mosaic.version = 11 : i64} {
  func.func @_attn_kernel_single(%arg0: i32, %arg1: memref<2x1x32xf32, #tpu.memory_space<vmem>>, %arg2: memref<2x8x32xf32, #tpu.memory_space<vmem>>, %arg3: memref<2x1x1xi32, #tpu.memory_space<vmem>>, %arg4: memref<2x1x8xf32, #tpu.memory_space<vmem>>) attributes {dimension_semantics = [#tpu.dimension_semantics<parallel>], iteration_bounds = array<i64: 1>, scalar_prefetch = 0 : i64, scratch_operands = 0 : i64, tpu.core_type = #tpu.core_type<tc>, window_params = [{transform_indices = @transform_0, window_bounds = array<i64: 2, 1, 32>}, {transform_indices = @transform_1, window_bounds = array<i64: 2, 8, 32>}, {transform_indices = @transform_2, window_bounds = array<i64: 2, 1, 1>}, {transform_indices = @transform_3, window_bounds = array<i64: 2, 1, 8>}]} {
    %c0 = arith.constant 0 : index
    %c0_0 = arith.constant 0 : index
    %c0_1 = arith.constant 0 : index
    %0 = vector.load %arg1[%c0, %c0_0, %c0_1] : memref<2x1x32xf32, #tpu.memory_space<vmem>>, vector<2x1x32xf32>
    %c0_2 = arith.constant 0 : index
    %c0_3 = arith.constant 0 : index
    %c0_4 = arith.constant 0 : index
    %1 = vector.load %arg2[%c0_2, %c0_3, %c0_4] : memref<2x8x32xf32, #tpu.memory_space<vmem>>, vector<2x8x32xf32>
    "tpu.trace_start"() <{level = 10 : i32, message = "bvh,blh->bvl"}> : () -> ()
    %cst = arith.constant dense<0.000000e+00> : vector<2x1x8xf32>
    %2 = tpu.matmul %0, %1, %cst {dimension_numbers = #tpu.dot_dimension_numbers<[2], [2], [1], [1], [0, 0, 0, 1, 1, 1], [0], [0]>} : vector<2x1x32xf32>, vector<2x8x32xf32>, vector<2x1x8xf32> -> vector<2x1x8xf32>
    "tpu.trace_stop"() : () -> ()
    %c0_5 = arith.constant 0 : index
    %c0_6 = arith.constant 0 : index
    %c0_7 = arith.constant 0 : index
    %3 = vector.load %arg3[%c0_5, %c0_6, %c0_7] : memref<2x1x1xi32, #tpu.memory_space<vmem>>, vector<2x1x1xi32>
    %4 = tpu.iota {dimensions = array<i32: 2>} : vector<2x1x8xi32>
    %5 = vector.broadcast %3 : vector<2x1x1xi32> to vector<2x1x8xi32>
    %6 = arith.cmpi slt, %4, %5 : vector<2x1x8xi32>
    %cst_8 = arith.constant 0xFF800000 : f32
    %7 = vector.broadcast %cst_8 : f32 to vector<2x1x8xf32>
    %8 = arith.select %6, %2, %7 : vector<2x1x8xi1>, vector<2x1x8xf32>
    %cst_9 = arith.constant dense<0xFF800000> : vector<2x1xf32>
    %9 = vector.multi_reduction <maximumf>, %8, %cst_9 [2] : vector<2x1x8xf32> to vector<2x1xf32>
    %10 = vector.shape_cast %9 : vector<2x1xf32> to vector<2x1x1xf32>
    %11 = vector.broadcast %10 : vector<2x1x1xf32> to vector<2x1x8xf32>
    %12 = arith.subf %8, %11 : vector<2x1x8xf32>
    %13 = math.exp %12 : vector<2x1x8xf32>
    %cst_10 = arith.constant dense<0.000000e+00> : vector<2x1xf32>
    %14 = vector.multi_reduction <add>, %13, %cst_10 [2] : vector<2x1x8xf32> to vector<2x1xf32>
    %15 = vector.shape_cast %14 : vector<2x1xf32> to vector<2x1x1xf32>
    %16 = tpu.reciprocal %15 : vector<2x1x1xf32> -> vector<2x1x1xf32>
    %17 = vector.broadcast %16 : vector<2x1x1xf32> to vector<2x1x8xf32>
    %18 = arith.mulf %13, %17 : vector<2x1x8xf32>
    %c0_11 = arith.constant 0 : index
    %c0_12 = arith.constant 0 : index
    %c0_13 = arith.constant 0 : index
    %19 = vector.load %arg4[%c0_11, %c0_12, %c0_13] : memref<2x1x8xf32, #tpu.memory_space<vmem>>, vector<2x1x8xf32>
    tpu.vector_store %arg4[%c0_11, %c0_12, %c0_13], %18 {strides = array<i32>} : memref<2x1x8xf32, #tpu.memory_space<vmem>>, vector<2x1x8xf32>,
    return
  }
  func.func @transform_0(%arg0: i32) -> (i32, i32, i32) {
    %c0_i32 = arith.constant 0 : i32
    %c0_i32_0 = arith.constant 0 : i32
    %c0_i32_1 = arith.constant 0 : i32
    return %arg0, %c0_i32, %c0_i32_0 : i32, i32, i32
  }
  func.func @transform_1(%arg0: i32) -> (i32, i32, i32) {
    %c0_i32 = arith.constant 0 : i32
    %c0_i32_0 = arith.constant 0 : i32
    %c0_i32_1 = arith.constant 0 : i32
    return %arg0, %c0_i32, %c0_i32_0 : i32, i32, i32
  }
  func.func @transform_2(%arg0: i32) -> (i32, i32, i32) {
    %c0_i32 = arith.constant 0 : i32
    %c0_i32_0 = arith.constant 0 : i32
    %c0_i32_1 = arith.constant 0 : i32
    return %arg0, %c0_i32, %c0_i32_0 : i32, i32, i32
  }
  func.func @transform_3(%arg0: i32) -> (i32, i32, i32) {
    %c0_i32 = arith.constant 0 : i32
    %c0_i32_0 = arith.constant 0 : i32
    %c0_i32_1 = arith.constant 0 : i32
    return %arg0, %c0_i32, %c0_i32_0 : i32, i32, i32
  }
}

</mosaic_0001>

<bundles_post_ra>
// kernel: tpu_custom_call.1
= control target key start
LH: loop header
LB: loop body
LE: loop exit
PB: predicated region body
PF: predicated region fallthrough
CT: control target
= control target key end

     0   :  { %8 = vsyncpa [#allocation3], 0  ;;  %s383_s0 = inlined_call_operand.vmem [shape: f32[2,1,32], index: 0, kind: input, shape index: {}]   ;;  %s384_s1 = inlined_call_operand.hbm [shape: f32[2,8,32], index: 1, kind: input, shape index: {}]   ;;  %s385_s2 = inlined_call_operand.vmem [shape: s32[2,1,1], index: 2, kind: input, shape index: {}]   ;;  %s386_s3 = inlined_call_operand.hbm [shape: f32[2,1,8], index: 3, kind: output, shape index: {}]  }
   0x1   :  { %9 = vsyncpa [#allocation4], 0  ;;  %s330_s12 = smov [#allocation2]  }
   0x2   :  { %s17_s13 = sshll.u32 %s330_s12, 4  ;;  %s18_s13 = int_to_ptr.vmem [resolvable:$true] %s17_s13 }
   0x3   :  { %s294_s14 = scalar_lea.vmem %s18_s13, 256  ;;  %p299_p1 = scmp.lt.s32.totalorder %s18_s13, %s18_s13 }
   0x4   :  { %p295_p0 = scmp.ne.s32.totalorder %s18_s13, %s294_s14  ;;  %p300_p2 = scmp.lt.s32.totalorder %s294_s14, %s294_s14 }
   0x6   :  { %p301_p3 = por %p300_p2, %p299_p1 }
   0x8   :  { %p302_p4 = pnand %p301_p3, %p295_p0 }
   0xa   :  { %305 = shalt.err (!%p302_p4)
}
   0xb   :  { %s331_s15 = smov 128   ;;  %s332_s16 = smov 8  }
   0xc   :  { %23 = dma.hbm_to_vmem [thread:$0]  %s384_s1, 256, %s18_s13, [#allocation3], %s331_s15, %s331_s15, %s332_s16  }
   0xd   :  { %326 = dma.done.wait [#allocation3], 256  }
   0xe   :  { %327 = vsyncadd [#allocation3], 4294967040  ;;  %v333_v0 = vmov 0.0   ;;  %vm334_vm0 = vmmov 0   ;;  %v335_v1 = vmov 0   ;;  %vm33_vm1 = vcmask 261120  }
   0xf   :  { %258 = vmatprep.subr.mxu0 %v333_v0  ;;  %263 = vmatprep.subr.mxu1 %v333_v0  ;;  %v31_v2 = vld [vmem:[#allocation2] sm:$0xff]  ;;  %v32_v3 = vld [vmem:[#allocation2 + $0x8] sm:$0xff]  ;;  %v188_v8 = vlaneseq  ;;  %vm208_vm3 = vcmask 57344  }
  0x10   :  { %260 = vmatprep.mubr.msk.f32.mxu0 %vm334_vm0, %v333_v0  ;;  %265 = vmatprep.mubr.msk.f32.mxu1 %vm334_vm0, %v333_v0  ;;  %v29_v4 = vld [vmem:[%s383_s0] sm:$0x1]  ;;  %v30_v5 = vld [vmem:[%s383_s0 + $0x1] sm:$0x1]  ;;  %s336_s0 = smov [#allocation5]  }
  0x11   :  { %277 = vset.pattern.permute.xlu0 %v335_v1  ;;  %259 = vmatpush3.xpose.msk.msra.mxu0 %vm33_vm1, %v31_v2  ;;  %v186_v6 = vld [vmem:[%s385_s2] sm:$0x1]  ;;  %v187_v7 = vld [vmem:[%s385_s2 + $0x1] sm:$0x1]  ;;  %v194_v9 = vshrl.u32 %v188_v8, 7  ;;  %v189_v14 = vand.u32 127, %v188_v8 }
  0x12   :  { %264 = vmatpush3.xpose.msk.msra.mxu1 %vm33_vm1, %v32_v3  ;;  %191 = vperm.xlu0 %277, %v186_v6   ;;  %s238_s2 = sshll.u32 %s336_s0, 4  ;;  %s239_s2 = int_to_ptr.vmem [resolvable:$true] %s238_s2 }
  0x13   :  { %v195_v11 = vsub.s32 0, %v194_v9  ;;  %s306_s26 = scalar_lea.vmem %s239_s2, 32  ;;  %p311_p6 = scmp.lt.s32.totalorder %s239_s2, %s239_s2 }
  0x14   :  { %261 = vmatmul.mubr.msk.f32.vlgmr.msra.gmra.mxu0 %vm33_vm1, %v29_v4  ;;  %p307_p5 = scmp.ne.s32.totalorder %s239_s2, %s306_s26  ;;  %p312_p7 = scmp.lt.s32.totalorder %s306_s26, %s306_s26 }
  0x15   :  { %266 = vmatmul.mubr.msk.f32.vlgmr.msra.gmra.mxu1 %vm33_vm1, %v30_v5 }
  0x16   :  { %198 = vperm.xlu0 %277, %v187_v7   ;;  %p313_p8 = por %p312_p7, %p311_p6 }
  0x18   :  { %p314_p9 = pnand %p313_p8, %p307_p5 }
  0x8d   :  { %v192_v10 = vpop.permute.xlu0 %191 }
  0x8e   :  { %v196_v13 = vrot.slane %v192_v10, %v195_v11 }
  0x90   :  { %vm204_vm2 = vcmp.lt.s32.totalorder %v189_v14, %v196_v13 }
  0x91   :  { %v199_v12 = vpop.permute.xlu0 %198 }
  0x92   :  { %v203_v15 = vrot.slane %v199_v12, %v195_v11 }
  0x94   :  { %vm205_vm4 = vcmp.lt.s32.totalorder %v189_v14, %v203_v15 }
  0xd4   :  { %v106_v16 = vpop.f32.mrf.mxu0 }
  0xd5   :  { %v182_v17 = vpop.f32.mrf.mxu1  ;;  %v206_v18 = vsel %vm204_vm2, %v106_v16, -inf }
  0xd6   :  { %v262_v19 = vpop.f32.mrf.mxu0  ;;  %v209_v20 = vsel %vm208_vm3, %v206_v18, -inf  ;;  %v207_v22 = vsel %vm205_vm4, %v182_v17, -inf }
  0xd7   :  { %v267_v21 = vpop.f32.mrf.mxu1  ;;  %210 = vmax.xlane.f32.xlu1 %v209_v20  ;;  %v212_v23 = vsel %vm208_vm3, %v207_v22, -inf }
  0xdb   :  { %213 = vmax.xlane.f32.xlu1 %v212_v23 }
 0x160   :  { %v211_v24 = vpop.xlane.xlu1 %210 }
 0x161   :  { %v215_v25 = vsub.f32 %v206_v18, %v211_v24 }
 0x163   :  { %v217_v26 = vmul.f32 1.442695, %v215_v25 }
 0x164   :  { %v214_v27 = vpop.xlane.xlu1 %213 }
 0x165   :  { %278 = vpow2.f32 %v217_v26  ;;  %v216_v28 = vsub.f32 %v207_v22, %v214_v27 }
 0x167   :  { %v219_v29 = vmul.f32 1.442695, %v216_v28 }
 0x169   :  { %280 = vpow2.f32 %v219_v29 }
 0x172   :  { %v279_v30 = vpop.eup %278 }
 0x173   :  { %v221_v31 = vsel %vm208_vm3, %v279_v30, 0.0 }
 0x174   :  { %222 = vadd.xlane.f32.xlu0 %v221_v31 }
 0x176   :  { %v281_v32 = vpop.eup %280 }
 0x177   :  { %v224_v33 = vsel %vm208_vm3, %v281_v32, 0.0 }
 0x178   :  { %225 = vadd.xlane.f32.xlu1 %v224_v33 }
 0x1fd   :  { %v223_v34 = vpop.xlane.xlu0 %222 }
 0x1fe   :  { %282 = vrcp.f32 %v223_v34 }
 0x201   :  { %v226_v35 = vpop.xlane.xlu1 %225 }
 0x202   :  { %284 = vrcp.f32 %v226_v35 }
 0x20b   :  { %v283_v36 = vpop.eup %282 }
 0x20c   :  { %v229_v37 = vmul.f32 %v283_v36, %v279_v30 }
 0x20e   :  { %231 = vst.msk [vmem:[#allocation5] sm:$0x1] %vm208_vm3, %v229_v37 }
 0x20f   :  { %v285_v38 = vpop.eup %284 }
 0x210   :  { %v230_v39 = vmul.f32 %v285_v38, %v281_v32 }
 0x212   :  { %232 = vst.msk [vmem:[#allocation5 + $0x1] sm:$0x1] %vm208_vm3, %v230_v39 }
 0x213   :  { %317 = shalt.err (!%p314_p9)
}
 0x214   :  { %s337_s27 = smov 16   ;;  %s338_s28 = smov 1  }
 0x215   :  { %244 = dma.vmem_to_hbm [thread:$0]  %s239_s2, 32, %s386_s3, [#allocation4], %s337_s27, %s337_s27, %s338_s28  }
 0x216   :  { %328 = dma.done.wait [#allocation4], 32  }
 0x217   :  { %329 = vsyncadd [#allocation4], 4294967264 }
 0x218   :  { %248 = vsyncpa [#allocation3], 1 }
 0x219   :  { %249 = vsyncpa [#allocation4], 1 }

</bundles_post_ra>
